<compile_context>
chip_gen: v7x
topology: tpu7x:2x2x1
jax: 0.10.0
libtpu: 0.0.40
codegen_flags: <defaults>
</compile_context>

<pallas_src>
import math

import jax
import jax.numpy as jnp
from jax.experimental import pallas as pl
from jax.experimental.pallas import tpu as pltpu


def _gcn_fused_kernel(x_ref, w_ref, adj_ref, bias_ref, o_ref, support_ref):
    # x_ref:      (tk, in_fp)   f32   -- K-slab of node features
    # w_ref:      (in_fp, out_fp) bf16 -- full weight (VMEM resident)
    # adj_ref:    (tm, tk)      f32   -- adjacency tile
    # bias_ref:   (1, out_fp)   f32
    # o_ref:      (tm, out_fp)  f32   -- resident across the k axis (accumulator)
    # support_ref:(n_k, tk, out_fp) bf16 -- persistent scratch holding x @ W
    i = pl.program_id(0)  # output row tile
    k = pl.program_id(1)  # reduction (node) tile

    # Phase 1: on the first row-tile only, materialize this K-slab of
    # support = x @ W into the persistent VMEM scratch (bf16, MXU-ready).
    @pl.when(i == 0)
    def _():
        s = jnp.dot(
            x_ref[...].astype(jnp.bfloat16),
            w_ref[...],
            preferred_element_type=jnp.float32,
        )
        support_ref[k] = s.astype(jnp.bfloat16)

    # Phase 2: accumulate adj-row-tile @ support-slab into the VMEM-resident
    # output block.  Initialise with the bias (fused bias add, costs nothing).
    @pl.when(k == 0)
    def _():
        o_ref[...] = jnp.broadcast_to(bias_ref[...], o_ref.shape)

    o_ref[...] += jnp.dot(
        adj_ref[...].astype(jnp.bfloat16),
        support_ref[k],
        preferred_element_type=jnp.float32,
    )


def _round_up(x, m):
    return ((x + m - 1) // m) * m


def _pad2d(a, rows, cols, dtype):
    a = a.astype(dtype)
    if a.shape == (rows, cols):
        return a
    return jnp.zeros((rows, cols), dtype).at[: a.shape[0], : a.shape[1]].set(a)


def graph_convolution_forward(x, adj, weight, bias=None, *, tm=256, tk=512):
    """Fused Pallas forward: adj @ (x @ weight) + bias."""
    N, in_f = x.shape
    assert adj.shape == (N, N)
    in_f2, out_f = weight.shape
    assert in_f2 == in_f

    LANE = 128
    # Lane-dense feature dims.
    in_fp = _round_up(in_f, LANE)
    out_fp = _round_up(out_f, LANE)

    # Node-dimension padding: clamp tiles to the (128-aligned) problem size so
    # small graphs use a single tile while large graphs get pipelined tm x tk
    # tiles; no "N % tile == 0" requirement.
    n_aligned = _round_up(N, LANE)
    tm = min(tm, n_aligned)
    tk = min(tk, n_aligned)
    Mp = _round_up(N, tm)  # padded rows of adj / output
    Kp = _round_up(N, tk)  # padded reduction dim of adj == padded rows of x
    n_k = Kp // tk

    f32 = jnp.float32
    x_p = _pad2d(x, Kp, in_fp, f32)                    # cast to bf16 per-slab in-kernel
    w_p = _pad2d(weight, in_fp, out_fp, jnp.bfloat16)  # tiny parameter: cast once here
    adj_p = _pad2d(adj, Mp, Kp, f32)                   # cast to bf16 per-tile in-kernel
    if bias is None:
        b_p = jnp.zeros((1, out_fp), f32)
    else:
        b_p = _pad2d(bias.reshape(1, out_f), 1, out_fp, f32)

    out_p = pl.pallas_call(
        _gcn_fused_kernel,
        out_shape=jax.ShapeDtypeStruct((Mp, out_fp), f32),
        grid_spec=pltpu.PrefetchScalarGridSpec(
            num_scalar_prefetch=0,
            grid=(Mp // tm, n_k),  # (row tiles, reduction tiles) -- reduction last
            in_specs=[
                pl.BlockSpec((tk, in_fp), lambda i, k: (k, 0)),       # x K-slab
                pl.BlockSpec((in_fp, out_fp), lambda i, k: (0, 0)),   # weight (resident)
                pl.BlockSpec((tm, tk), lambda i, k: (i, k)),          # adj tile
                pl.BlockSpec((1, out_fp), lambda i, k: (0, 0)),       # bias row
            ],
            out_specs=pl.BlockSpec((tm, out_fp), lambda i, k: (i, 0)),
            # Persistent bf16 scratch holding the full support = x @ W.
            # TODO(synk): for very large graphs (N * out_fp * 2 bytes approaching
            # the VMEM budget) fall back to a two-pass / HBM-backed support.
            scratch_shapes=[pltpu.VMEM((n_k, tk, out_fp), jnp.bfloat16)],
        ),
        compiler_params=pltpu.CompilerParams(
            # Row axis must stay "arbitrary": the support scratch is filled only
            # on the first row-tile, so sharding rows across v7x's two cores
            # would leave one core with an uninitialized scratch.
            # TODO(synk): v7x megacore row-parallel split of the fused kernel.
            dimension_semantics=("arbitrary", "arbitrary"),
            vmem_limit_bytes=48 * 1024 * 1024,  # headroom; safe on v5e/v6e/v7x
        ),
    )(x_p, w_p, adj_p, b_p)

    return out_p[:N, :out_f]


def init_gcn_params(key, in_features, out_features, with_bias=True):
    """Mimic reset_parameters(): uniform(-stdv, stdv), stdv = 1/sqrt(out_features)."""
    stdv = 1.0 / math.sqrt(out_features)
    kw, kb = jax.random.split(key)
    weight = jax.random.uniform(
        kw, (in_features, out_features), jnp.float32, minval=-stdv, maxval=stdv
    )
    bias = None
    if with_bias:
        bias = jax.random.uniform(
            kb, (out_features,), jnp.float32, minval=-stdv, maxval=stdv
        )
    return weight, bias


if __name__ == "__main__":
    key = jax.random.PRNGKey(0)
    k_x, k_adj, k_param = jax.random.split(key, 3)

    N = 200            # deliberately not 8/128-aligned: exercises the padding path
    in_features = 48
    out_features = 16

    x = jax.random.normal(k_x, (N, in_features), jnp.float32)

    # Dense symmetric-ish row-normalized adjacency (synthetic).
    a_raw = (jax.random.uniform(k_adj, (N, N)) < 0.05).astype(jnp.float32)
    adj = a_raw + a_raw.T + jnp.eye(N, dtype=jnp.float32)
    deg = jnp.sum(adj, axis=1, keepdims=True)
    adj = adj / deg

    weight, bias = init_gcn_params(k_param, in_features, out_features, with_bias=True)

    # Reference in plain JAX (f32).
    ref = adj @ (x @ weight) + bias

    # 1) Default tiles (single tile for this small graph).
    out = graph_convolution_forward(x, adj, weight, bias)
    out = jax.block_until_ready(out)
    assert out.shape == (N, out_features)
    # bf16 MXU operands with f32 accumulation: ~1e-2-level relative error budget.
    assert jnp.allclose(out, ref, atol=3e-2, rtol=3e-2)

    # 2) Small tiles to exercise the multi-tile grid (support reuse across row
    #    tiles + k-accumulation + tail padding).
    out2 = graph_convolution_forward(x, adj, weight, bias, tm=128, tk=128)
    out2 = jax.block_until_ready(out2)
    assert jnp.allclose(out2, ref, atol=3e-2, rtol=3e-2)

    # No-bias path.
    out3 = graph_convolution_forward(x, adj, weight, None, tm=128, tk=128)
    out3 = jax.block_until_ready(out3)
    assert jnp.allclose(out3, ref - bias, atol=3e-2, rtol=3e-2)

    print("KERNEL_OK")
</pallas_src>

<mosaic_0001>
module attributes {stable_mosaic.version = 11 : i64} {
  func.func @_gcn_fused_kernel(%arg0: i32, %arg1: i32, %arg2: memref<256x128xf32, #tpu.memory_space<vmem>>, %arg3: memref<128x128xbf16, #tpu.memory_space<vmem>>, %arg4: memref<256x256xf32, #tpu.memory_space<vmem>>, %arg5: memref<1x128xf32, #tpu.memory_space<vmem>>, %arg6: memref<256x128xf32, #tpu.memory_space<vmem>>, %arg7: memref<1x256x128xbf16, #tpu.memory_space<vmem>>) attributes {dimension_semantics = [#tpu.dimension_semantics<arbitrary>, #tpu.dimension_semantics<arbitrary>], iteration_bounds = array<i64: 1, 1>, scalar_prefetch = 0 : i64, scratch_operands = 1 : i64, tpu.core_type = #tpu.core_type<tc>, window_params = [{transform_indices = @transform_0, window_bounds = array<i64: 256, 128>}, {pipeline_mode = #tpu.pipeline_mode<synchronous>, transform_indices = @transform_1, window_bounds = array<i64: 128, 128>}, {transform_indices = @transform_2, window_bounds = array<i64: 256, 256>}, {pipeline_mode = #tpu.pipeline_mode<synchronous>, transform_indices = @transform_3, window_bounds = array<i64: 1, 128>}, {transform_indices = @transform_4, window_bounds = array<i64: 256, 128>}]} {
    %c0_i32 = arith.constant 0 : i32
    %0 = arith.cmpi eq, %arg0, %c0_i32 : i32
    %1 = arith.extui %0 : i1 to i32
    %c0_i32_0 = arith.constant 0 : i32
    %2 = arith.cmpi ne, %1, %c0_i32_0 : i32
    scf.if %2 {
      %c0_10 = arith.constant 0 : index
      %c0_11 = arith.constant 0 : index
      %15 = vector.load %arg2[%c0_10, %c0_11] : memref<256x128xf32, #tpu.memory_space<vmem>>, vector<256x128xf32>
      %16 = arith.truncf %15 : vector<256x128xf32> to vector<256x128xbf16>
      %c0_12 = arith.constant 0 : index
      %c0_13 = arith.constant 0 : index
      %17 = vector.load %arg3[%c0_12, %c0_13] : memref<128x128xbf16, #tpu.memory_space<vmem>>, vector<128x128xbf16>
      %cst_14 = arith.constant dense<0.000000e+00> : vector<256x128xf32>
      %18 = tpu.matmul %16, %17, %cst_14 {dimension_numbers = #tpu.dot_dimension_numbers<[1], [0], [0], [1], [0, 0, 1, 1], [], []>} : vector<256x128xbf16>, vector<128x128xbf16>, vector<256x128xf32> -> vector<256x128xf32>
      %19 = arith.truncf %18 : vector<256x128xf32> to vector<256x128xbf16>
      %20 = arith.index_cast %arg1 : i32 to index
      %c0_15 = arith.constant 0 : index
      %c0_16 = arith.constant 0 : index
      %21 = vector.load %arg7[%20, %c0_15, %c0_16] : memref<1x256x128xbf16, #tpu.memory_space<vmem>>, vector<1x256x128xbf16>
      %22 = vector.shape_cast %21 : vector<1x256x128xbf16> to vector<256x128xbf16>
      %23 = vector.shape_cast %19 : vector<256x128xbf16> to vector<1x256x128xbf16>
      tpu.vector_store %arg7[%20, %c0_15, %c0_16], %23 {strides = array<i32>} : memref<1x256x128xbf16, #tpu.memory_space<vmem>>, vector<1x256x128xbf16>,
    } else {
    }
    %c0_i32_1 = arith.constant 0 : i32
    %3 = arith.cmpi eq, %arg1, %c0_i32_1 : i32
    %4 = arith.extui %3 : i1 to i32
    %c0_i32_2 = arith.constant 0 : i32
    %5 = arith.cmpi ne, %4, %c0_i32_2 : i32
    scf.if %5 {
      %c0_10 = arith.constant 0 : index
      %c0_11 = arith.constant 0 : index
      %15 = vector.load %arg5[%c0_10, %c0_11] : memref<1x128xf32, #tpu.memory_space<vmem>>, vector<1x128xf32>
      %16 = vector.shape_cast %15 : vector<1x128xf32> to vector<1x128xf32>
      %17 = vector.broadcast %16 : vector<1x128xf32> to vector<256x128xf32>
      %c0_12 = arith.constant 0 : index
      %c0_13 = arith.constant 0 : index
      %18 = vector.load %arg6[%c0_12, %c0_13] : memref<256x128xf32, #tpu.memory_space<vmem>>, vector<256x128xf32>
      tpu.vector_store %arg6[%c0_12, %c0_13], %17 {strides = array<i32>} : memref<256x128xf32, #tpu.memory_space<vmem>>, vector<256x128xf32>,
    } else {
    }
    %c0 = arith.constant 0 : index
    %c0_3 = arith.constant 0 : index
    %6 = vector.load %arg6[%c0, %c0_3] : memref<256x128xf32, #tpu.memory_space<vmem>>, vector<256x128xf32>
    %c0_4 = arith.constant 0 : index
    %c0_5 = arith.constant 0 : index
    %7 = vector.load %arg4[%c0_4, %c0_5] : memref<256x256xf32, #tpu.memory_space<vmem>>, vector<256x256xf32>
    %8 = arith.truncf %7 : vector<256x256xf32> to vector<256x256xbf16>
    %9 = arith.index_cast %arg1 : i32 to index
    %c0_6 = arith.constant 0 : index
    %c0_7 = arith.constant 0 : index
    %10 = vector.load %arg7[%9, %c0_6, %c0_7] : memref<1x256x128xbf16, #tpu.memory_space<vmem>>, vector<1x256x128xbf16>
    %11 = vector.shape_cast %10 : vector<1x256x128xbf16> to vector<256x128xbf16>
    %cst = arith.constant dense<0.000000e+00> : vector<256x128xf32>
    %12 = tpu.matmul %8, %11, %cst {dimension_numbers = #tpu.dot_dimension_numbers<[1], [0], [0], [1], [0, 0, 1, 1], [], []>} : vector<256x256xbf16>, vector<256x128xbf16>, vector<256x128xf32> -> vector<256x128xf32>
    %13 = arith.addf %6, %12 : vector<256x128xf32>
    %c0_8 = arith.constant 0 : index
    %c0_9 = arith.constant 0 : index
    %14 = vector.load %arg6[%c0_8, %c0_9] : memref<256x128xf32, #tpu.memory_space<vmem>>, vector<256x128xf32>
    tpu.vector_store %arg6[%c0_8, %c0_9], %13 {strides = array<i32>} : memref<256x128xf32, #tpu.memory_space<vmem>>, vector<256x128xf32>,
    return
  }
  func.func @transform_0(%arg0: i32, %arg1: i32) -> (i32, i32) {
    %c0_i32 = arith.constant 0 : i32
    %c0_i32_0 = arith.constant 0 : i32
    return %arg1, %c0_i32 : i32, i32
  }
  func.func @transform_1(%arg0: i32, %arg1: i32) -> (i32, i32) {
    %c0_i32 = arith.constant 0 : i32
    %c0_i32_0 = arith.constant 0 : i32
    %c0_i32_1 = arith.constant 0 : i32
    return %c0_i32, %c0_i32_0 : i32, i32
  }
  func.func @transform_2(%arg0: i32, %arg1: i32) -> (i32, i32) {
    %c0_i32 = arith.constant 0 : i32
    return %arg0, %arg1 : i32, i32
  }
  func.func @transform_3(%arg0: i32, %arg1: i32) -> (i32, i32) {
    %c0_i32 = arith.constant 0 : i32
    %c0_i32_0 = arith.constant 0 : i32
    %c0_i32_1 = arith.constant 0 : i32
    return %c0_i32, %c0_i32_0 : i32, i32
  }
  func.func @transform_4(%arg0: i32, %arg1: i32) -> (i32, i32) {
    %c0_i32 = arith.constant 0 : i32
    %c0_i32_0 = arith.constant 0 : i32
    return %arg0, %c0_i32 : i32, i32
  }
}

</mosaic_0001>

<bundles_post_ra>
// kernel: tpu_custom_call.1
= control target key start
LH: loop header
LB: loop body
LE: loop exit
PB: predicated region body
PF: predicated region fallthrough
CT: control target
= control target key end

     0   :  { %9 = vsyncpa [#allocation4], 0  ;;  %s1256_s0 = inlined_call_operand.hbm [shape: f32[256,128], index: 0, kind: input, shape index: {}]   ;;  %s1257_s1 = inlined_call_operand.hbm [shape: bf16[128,128], index: 1, kind: input, shape index: {}]   ;;  %s1258_s2 = inlined_call_operand.hbm [shape: f32[256,256], index: 2, kind: input, shape index: {}]   ;;  %s1259_s3 = inlined_call_operand.vmem [shape: f32[1,128], index: 3, kind: input, shape index: {}]   ;;  %s1260_s4 = inlined_call_operand.hbm [shape: f32[256,128], index: 4, kind: output, shape index: {}]  }
   0x1   :  { %10 = vsyncpa [#allocation7], 0 }
   0x2   :  { %11 = vsyncpa [#allocation5], 0  ;;  %s1126_s15 = smov [#allocation6]   ;;  %s1032_s19 = scalar_lea.hbm %s1257_s1, 1024 }
   0x3   :  { %s29_s16 = sshll.u32 %s1126_s15, 4  ;;  %p1033_p0 = scmp.ne.s32.totalorder %s1257_s1, %s1032_s19  ;;  %s30_s16 = int_to_ptr.vmem [resolvable:$true] %s29_s16 }
   0x4   :  { %p1036_p1 = scmp.lt.u32.totalorder %s1032_s19, %s1257_s1 }
   0x6   :  { %p1038_p2 = pnand %p1036_p1, %p1033_p0 }
   0x8   :  { %1041 = shalt.err (!%p1038_p2)
}
   0x9   :  { %s1042_s24 = scalar_lea.vmem %s30_s16, 1024  ;;  %p1047_p4 = scmp.lt.s32.totalorder %s30_s16, %s30_s16 }
   0xa   :  { %p1043_p3 = scmp.ne.s32.totalorder %s30_s16, %s1042_s24  ;;  %p1048_p5 = scmp.lt.s32.totalorder %s1042_s24, %s1042_s24 }
   0xc   :  { %p1049_p6 = por %p1048_p5, %p1047_p4 }
   0xe   :  { %p1050_p7 = pnand %p1049_p6, %p1043_p3 }
  0x10   :  { %1053 = shalt.err (!%p1050_p7)
}
  0x11   :  { %s1127_s25 = smov 64   ;;  %s1128_s26 = smov 4  }
  0x12   :  { %35 = dma.hbm_to_vmem [thread:$0]  %s1257_s1, 1024, %s30_s16, [#allocation7], %s1127_s25, %s1127_s25, %s1128_s26  }
  0x13   :  { %s1129_s29 = smov [#allocation3]   ;;  %s1054_s7 = scalar_lea.hbm %s1256_s0, 4096 }
  0x14   :  { %s17_s30 = sshll.u32 %s1129_s29, 4  ;;  %p1055_p8 = scmp.ne.s32.totalorder %s1256_s0, %s1054_s7  ;;  %s18_s30 = int_to_ptr.vmem [resolvable:$true] %s17_s30 }
  0x15   :  { %p1058_p9 = scmp.lt.u32.totalorder %s1054_s7, %s1256_s0 }
  0x17   :  { %p1060_p10 = pnand %p1058_p9, %p1055_p8 }
  0x19   :  { %1063 = shalt.err (!%p1060_p10)
}
  0x1a   :  { %s1064_s12 = scalar_lea.vmem %s18_s30, 4096  ;;  %p1069_p12 = scmp.lt.s32.totalorder %s18_s30, %s18_s30 }
  0x1b   :  { %p1065_p11 = scmp.ne.s32.totalorder %s18_s30, %s1064_s12  ;;  %p1070_p13 = scmp.lt.s32.totalorder %s1064_s12, %s1064_s12 }
  0x1d   :  { %p1071_p0 = por %p1070_p13, %p1069_p12 }
  0x1f   :  { %p1072_p1 = pnand %p1071_p0, %p1065_p11 }
  0x21   :  { %1075 = shalt.err (!%p1072_p1)
}
  0x22   :  { %s1130_s1 = smov 128   ;;  %s1131_s13 = smov 8  }
  0x23   :  { %23 = dma.hbm_to_vmem [thread:$0]  %s1256_s0, 4096, %s18_s30, [#allocation4], %s1130_s1, %s1130_s1, %s1131_s13  }
  0x24   :  { %s1132_s16 = smov [#allocation8]   ;;  %s1076_s20 = scalar_lea.hbm %s1258_s2, 8192 }
  0x25   :  { %s41_s17 = sshll.u32 %s1132_s16, 4  ;;  %p1077_p2 = scmp.ne.s32.totalorder %s1258_s2, %s1076_s20  ;;  %s42_s17 = int_to_ptr.vmem [resolvable:$true] %s41_s17 }
  0x26   :  { %p1080_p3 = scmp.lt.u32.totalorder %s1076_s20, %s1258_s2 }
  0x28   :  { %p1082_p4 = pnand %p1080_p3, %p1077_p2 }
  0x2a   :  { %1085 = shalt.err (!%p1082_p4)
}
  0x2b   :  { %s1086_s25 = scalar_lea.vmem %s42_s17, 8192  ;;  %p1091_p6 = scmp.lt.s32.totalorder %s42_s17, %s42_s17 }
  0x2c   :  { %p1087_p5 = scmp.ne.s32.totalorder %s42_s17, %s1086_s25  ;;  %p1092_p7 = scmp.lt.s32.totalorder %s1086_s25, %s1086_s25 }
  0x2e   :  { %p1093_p8 = por %p1092_p7, %p1091_p6 }
  0x30   :  { %p1094_p9 = pnand %p1093_p8, %p1087_p5 }
  0x32   :  { %1097 = shalt.err (!%p1094_p9)
}
  0x33   :  { %s1133_s0 = smov 256   ;;  %s1134_s26 = smov 16  }
  0x34   :  { %47 = dma.hbm_to_vmem [thread:$0]  %s1258_s2, 8192, %s42_s17, [#allocation7], %s1133_s0, %s1133_s0, %s1134_s26  }
  0x35   :  { %1120 = dma.done.wait [#allocation4], 4096  }
  0x36   :  { %1121 = vsyncadd [#allocation4], 4294963200 }
  0x37   :  { %1122 = dma.done.wait [#allocation7], 9216  }
  0x38   :  { %1123 = vsyncadd [#allocation7], 4294958080  ;;  %v1024_v0 = vld [vmem:[#allocation6] sm:$0xff]   ;;  %v1025_v1 = vld [vmem:[#allocation6 + $0x8] sm:$0xff]  }
  0x39   :  { %950 = vmatprep.subr.bf16.mxu0 %v1024_v0  ;;  %v1026_v2 = vld [vmem:[#allocation6 + $0x10] sm:$0xff]   ;;  %v1027_v3 = vld [vmem:[#allocation6 + $0x18] sm:$0xff]   ;;  %v64_v4 = vld [vmem:[#allocation3] sm:$0xff] }
  0x3a   :  { %951 = vmatpush3.bf16.msra.mxu0 %v1024_v0  ;;  %v65_v5 = vld [vmem:[#allocation3 + $0x8] sm:$0xff]  ;;  %v1028_v7 = vld [vmem:[#allocation6 + $0x20] sm:$0xff]   ;;  %v1030_v9 = vld [vmem:[#allocation6 + $0x30] sm:$0xff]  }
  0x3b   :  { %952 = vmatprep.subr.bf16.mxu0 %v1025_v1  ;;  %v96_v6 = vpack.c.bf16 %v65_v5, %v64_v4  ;;  %v1029_v8 = vld [vmem:[#allocation6 + $0x28] sm:$0xff]   ;;  %v1031_v10 = vld [vmem:[#allocation6 + $0x38] sm:$0xff]   ;;  %v66_v11 = vld [vmem:[#allocation3 + $0x10] sm:$0xff] }
  0x3c   :  { %v67_v12 = vld [vmem:[#allocation3 + $0x18] sm:$0xff]  ;;  %v68_v13 = vld [vmem:[#allocation3 + $0x20] sm:$0xff]  ;;  %v69_v14 = vld [vmem:[#allocation3 + $0x28] sm:$0xff] }
  0x3d   :  { %966 = vmatprep.mubr.bf16.mxu0 %v96_v6  ;;  %v97_v15 = vpack.c.bf16 %v67_v12, %v66_v11  ;;  %v98_v16 = vpack.c.bf16 %v69_v14, %v68_v13  ;;  %v70_v17 = vld [vmem:[#allocation3 + $0x30] sm:$0xff]  ;;  %v71_v18 = vld [vmem:[#allocation3 + $0x38] sm:$0xff]  ;;  %v72_v19 = vld [vmem:[#allocation3 + $0x40] sm:$0xff] }
  0x3e   :  { %953 = vmatpush3.bf16.msra.mxu0 %v1025_v1  ;;  %v73_v20 = vld [vmem:[#allocation3 + $0x48] sm:$0xff]  ;;  %v99_v21 = vpack.c.bf16 %v71_v18, %v70_v17  ;;  %v74_v23 = vld [vmem:[#allocation3 + $0x50] sm:$0xff]  ;;  %v75_v24 = vld [vmem:[#allocation3 + $0x58] sm:$0xff] }
  0x3f   :  { %954 = vmatprep.subr.bf16.mxu0 %v1026_v2  ;;  %v100_v22 = vpack.c.bf16 %v73_v20, %v72_v19  ;;  %v76_v25 = vld [vmem:[#allocation3 + $0x60] sm:$0xff]  ;;  %v77_v26 = vld [vmem:[#allocation3 + $0x68] sm:$0xff]  ;;  %v101_v27 = vpack.c.bf16 %v75_v24, %v74_v23  ;;  %v78_v29 = vld [vmem:[#allocation3 + $0x70] sm:$0xff] }
  0x40   :  { %v102_v28 = vpack.c.bf16 %v77_v26, %v76_v25  ;;  %v79_v30 = vld [vmem:[#allocation3 + $0x78] sm:$0xff]  ;;  %v80_v31 = vld [vmem:[#allocation3 + $0x80] sm:$0xff]  ;;  %v81_v32 = vld [vmem:[#allocation3 + $0x88] sm:$0xff] }
  0x41   :  { %v103_v33 = vpack.c.bf16 %v79_v30, %v78_v29  ;;  %v104_v34 = vpack.c.bf16 %v81_v32, %v80_v31  ;;  %v82_v35 = vld [vmem:[#allocation3 + $0x90] sm:$0xff]  ;;  %v83_v36 = vld [vmem:[#allocation3 + $0x98] sm:$0xff]  ;;  %v84_v37 = vld [vmem:[#allocation3 + $0xa0] sm:$0xff] }
  0x42   :  { %955 = vmatpush3.bf16.msra.mxu0 %v1026_v2  ;;  %v85_v38 = vld [vmem:[#allocation3 + $0xa8] sm:$0xff]  ;;  %v105_v39 = vpack.c.bf16 %v83_v36, %v82_v35  ;;  %v86_v41 = vld [vmem:[#allocation3 + $0xb0] sm:$0xff]  ;;  %v87_v42 = vld [vmem:[#allocation3 + $0xb8] sm:$0xff] }
  0x43   :  { %956 = vmatprep.subr.bf16.mxu0 %v1027_v3  ;;  %v106_v40 = vpack.c.bf16 %v85_v38, %v84_v37  ;;  %v88_v43 = vld [vmem:[#allocation3 + $0xc0] sm:$0xff]  ;;  %v89_v44 = vld [vmem:[#allocation3 + $0xc8] sm:$0xff]  ;;  %v107_v45 = vpack.c.bf16 %v87_v42, %v86_v41  ;;  %v90_v47 = vld [vmem:[#allocation3 + $0xd0] sm:$0xff] }
  0x44   :  { %v108_v46 = vpack.c.bf16 %v89_v44, %v88_v43  ;;  %v91_v48 = vld [vmem:[#allocation3 + $0xd8] sm:$0xff]  ;;  %v92_v49 = vld [vmem:[#allocation3 + $0xe0] sm:$0xff]  ;;  %v93_v50 = vld [vmem:[#allocation3 + $0xe8] sm:$0xff] }
  0x45   :  { %v109_v51 = vpack.c.bf16 %v91_v48, %v90_v47  ;;  %v110_v52 = vpack.c.bf16 %v93_v50, %v92_v49  ;;  %v94_v53 = vld [vmem:[#allocation3 + $0xf0] sm:$0xff]  ;;  %v95_v54 = vld [vmem:[#allocation3 + $0xf8] sm:$0xff]  ;;  %v464_v56 = vld [vmem:[#allocation8 + $0x88] sm:$0xff] }
  0x46   :  { %957 = vmatpush3.bf16.msra.mxu0 %v1027_v3  ;;  %v111_v55 = vpack.c.bf16 %v95_v54, %v94_v53  ;;  %v466_v57 = vld [vmem:[#allocation8 + $0x98] sm:$0xff]  ;;  %v448_v59 = vld [vmem:[#allocation8 + $0x8] sm:$0xff]  ;;  %v465_v47 = vld [vmem:[#allocation8 + $0x90] sm:$0xff] }
  0x47   :  { %958 = vmatprep.subr.bf16.mxu0 %v1028_v7  ;;  %v520_v58 = vpack.c.bf16 %v466_v57, %v464_v56  ;;  %v450_v60 = vld [vmem:[#allocation8 + $0x18] sm:$0xff]  ;;  %v468_v48 = vld [vmem:[#allocation8 + $0xa8] sm:$0xff]  ;;  %v447_v49 = vld [vmem:[#allocation8] sm:$0xff] }
  0x48   :  { %v512_v61 = vpack.c.bf16 %v450_v60, %v448_v59  ;;  %v449_v50 = vld [vmem:[#allocation8 + $0x10] sm:$0xff]  ;;  %v454_v53 = vld [vmem:[#allocation8 + $0x38] sm:$0xff]  ;;  %v472_v60 = vld [vmem:[#allocation8 + $0xc8] sm:$0xff] }
  0x49   :  { %626 = vmatprep.mubr.bf16.mxu1 %v520_v58  ;;  %v467_v58 = vld [vmem:[#allocation8 + $0xa0] sm:$0xff]  ;;  %v469_v59 = vld [vmem:[#allocation8 + $0xb0] sm:$0xff] }
  0x4a   :  { %959 = vmatpush3.bf16.msra.mxu0 %v1028_v7 }
  0x4b   :  { %960 = vmatprep.subr.bf16.mxu0 %v1029_v8 }
  0x4e   :  { %961 = vmatpush3.bf16.msra.mxu0 %v1029_v8 }
  0x4f   :  { %962 = vmatprep.subr.bf16.mxu0 %v1030_v9 }
  0x52   :  { %963 = vmatpush3.bf16.msra.mxu0 %v1030_v9 }
  0x53   :  { %964 = vmatprep.subr.bf16.mxu0 %v1031_v10 }
  0x56   :  { %965 = vmatpush3.bf16.msra.mxu0 %v1031_v10 }
  0x59   :  { %967 = vmatmul.mubr.bf16.vlgmr.msra.gmra.mrb[0].mxu0 %v97_v15 }
  0x5a   :  { %970 = vmatprep.mubr.bf16.mxu0 %v98_v16 }
  0x61   :  { %971 = vmatmul.mubr.bf16.gmra.mrb[4].mxu0 %v99_v21 }
  0x62   :  { %974 = vmatprep.mubr.bf16.mxu0 %v100_v22 }
  0x69   :  { %975 = vmatmul.mubr.bf16.gmra.mrb[8].mxu0 %v101_v27 }
  0x6a   :  { %978 = vmatprep.mubr.bf16.mxu0 %v102_v28 }
  0x71   :  { %979 = vmatmul.mubr.bf16.gmra.mrb[12].mxu0 %v103_v33 }
  0x72   :  { %982 = vmatprep.mubr.bf16.mxu0 %v104_v34 }
  0x79   :  { %983 = vmatmul.mubr.bf16.gmra.mrb[16].mxu0 %v105_v39 }
  0x7a   :  { %986 = vmatprep.mubr.bf16.mxu0 %v106_v40 }
  0x81   :  { %987 = vmatmul.mubr.bf16.gmra.mrb[20].mxu0 %v107_v45 }
  0x82   :  { %990 = vmatprep.mubr.bf16.mxu0 %v108_v46  ;;  %v463_v46 = vld [vmem:[#allocation8 + $0x80] sm:$0xff] }
  0x83   :  { %v519_v54 = vpack.c.bf16 %v465_v47, %v463_v46  ;;  %v493_v46 = vld [vmem:[#allocation8 + $0x170] sm:$0xff]  ;;  %v496_v47 = vld [vmem:[#allocation8 + $0x188] sm:$0xff] }
  0x89   :  { %991 = vmatmul.mubr.bf16.gmra.mrb[24].mxu0 %v109_v51  ;;  %v470_v51 = vld [vmem:[#allocation8 + $0xb8] sm:$0xff] }
  0x8a   :  { %994 = vmatprep.mubr.bf16.mxu0 %v110_v52  ;;  %v452_v52 = vld [vmem:[#allocation8 + $0x28] sm:$0xff]  ;;  %v522_v56 = vpack.c.bf16 %v470_v51, %v468_v48  ;;  %v498_v48 = vld [vmem:[#allocation8 + $0x198] sm:$0xff]  ;;  %v495_v51 = vld [vmem:[#allocation8 + $0x180] sm:$0xff] }
  0x8b   :  { %v514_v57 = vpack.c.bf16 %v454_v53, %v452_v52  ;;  %v497_v52 = vld [vmem:[#allocation8 + $0x190] sm:$0xff]  ;;  %v500_v53 = vld [vmem:[#allocation8 + $0x1a8] sm:$0xff] }
  0x91   :  { %995 = vmatmul.mubr.bf16.gmra.mrb[28].mxu0 %v111_v55  ;;  %v511_v55 = vpack.c.bf16 %v449_v50, %v447_v49  ;;  %v536_v50 = vpack.c.bf16 %v498_v48, %v496_v47 }
  0x92   :  { %594 = vmatprep.mubr.bf16.mxu0 %v512_v61  ;;  %v451_v61 = vld [vmem:[#allocation8 + $0x20] sm:$0xff] }
 0x12c   :  { %v968_v62 = vpop.f32.mrb[0].mxu0 }
 0x12d   :  { %v210_v63 = vpop.f32.mrb[1].mxu0 }
 0x12e   :  { %v969_v0 = vpop.f32.mrb[2].mxu0 }
 0x12f   :  { %v338_v1 = vpack.c.bf16 %v969_v0, %v968_v62  ;;  %v213_v2 = vpop.f32.mrb[3].mxu0  ;;  %v453_v62 = vld [vmem:[#allocation8 + $0x30] sm:$0xff]  ;;  %v456_v0 = vld [vmem:[#allocation8 + $0x48] sm:$0xff] }
 0x130   :  { %v337_v3 = vpack.c.bf16 %v213_v2, %v210_v63  ;;  %v474_v63 = vld [vmem:[#allocation8 + $0xd8] sm:$0xff]  ;;  %v521_v2 = vpack.c.bf16 %v469_v59, %v467_v58  ;;  %v501_v58 = vld [vmem:[#allocation8 + $0x1b0] sm:$0xff]  ;;  %v504_v59 = vld [vmem:[#allocation8 + $0x1c8] sm:$0xff] }
 0x134   :  { %v972_v4 = vpop.f32.mrb[4].mxu0 }
 0x135   :  { %v226_v5 = vpop.f32.mrb[5].mxu0 }
 0x136   :  { %v973_v6 = vpop.f32.mrb[6].mxu0 }
 0x137   :  { %v340_v7 = vpack.c.bf16 %v973_v6, %v972_v4  ;;  %v229_v8 = vpop.f32.mrb[7].mxu0  ;;  %v524_v4 = vpack.c.bf16 %v474_v63, %v472_v60  ;;  %v471_v6 = vld [vmem:[#allocation8 + $0xc0] sm:$0xff]  ;;  %v506_v60 = vld [vmem:[#allocation8 + $0x1d8] sm:$0xff] }
 0x138   :  { %v339_v9 = vpack.c.bf16 %v229_v8, %v226_v5  ;;  %v476_v8 = vld [vmem:[#allocation8 + $0xe8] sm:$0xff]  ;;  %v503_v63 = vld [vmem:[#allocation8 + $0x1c0] sm:$0xff] }
 0x13c   :  { %v976_v10 = vpop.f32.mrb[8].mxu0 }
 0x13d   :  { %v242_v11 = vpop.f32.mrb[9].mxu0 }
 0x13e   :  { %v977_v12 = vpop.f32.mrb[10].mxu0 }
 0x13f   :  { %v342_v13 = vpack.c.bf16 %v977_v12, %v976_v10  ;;  %v245_v14 = vpop.f32.mrb[11].mxu0  ;;  %v457_v10 = vld [vmem:[#allocation8 + $0x50] sm:$0xff]  ;;  %v460_v12 = vld [vmem:[#allocation8 + $0x68] sm:$0xff] }
 0x140   :  { %v341_v15 = vpack.c.bf16 %v245_v14, %v242_v11  ;;  %v478_v11 = vld [vmem:[#allocation8 + $0xf8] sm:$0xff] }
 0x144   :  { %v980_v16 = vpop.f32.mrb[12].mxu0 }
 0x145   :  { %v258_v17 = vpop.f32.mrb[13].mxu0 }
 0x146   :  { %v981_v18 = vpop.f32.mrb[14].mxu0 }
 0x147   :  { %v1200_v19 = vpack.c.bf16 %v981_v18, %v980_v16  ;;  %v261_v20 = vpop.f32.mrb[15].mxu0  ;;  %v526_v16 = vpack.c.bf16 %v478_v11, %v476_v8  ;;  %v475_v18 = vld [vmem:[#allocation8 + $0xe0] sm:$0xff] }
 0x148   :  { %v343_v21 = vpack.c.bf16 %v261_v20, %v258_v17  ;;  %v459_v20 = vld [vmem:[#allocation8 + $0x60] sm:$0xff] }
 0x14c   :  { %v984_v22 = vpop.f32.mrb[16].mxu0 }
 0x14d   :  { %v274_v23 = vpop.f32.mrb[17].mxu0 }
 0x14e   :  { %v985_v24 = vpop.f32.mrb[18].mxu0 }
 0x14f   :  { %v346_v25 = vpack.c.bf16 %v985_v24, %v984_v22  ;;  %v277_v26 = vpop.f32.mrb[19].mxu0  ;;  %v480_v22 = vld [vmem:[#allocation8 + $0x108] sm:$0xff] }
 0x150   :  { %v345_v27 = vpack.c.bf16 %v277_v26, %v274_v23  ;;  %v482_v23 = vld [vmem:[#allocation8 + $0x118] sm:$0xff] }
 0x151   :  { %v528_v26 = vpack.c.bf16 %v482_v23, %v480_v22 }
 0x152   :  { %838 = vmatprep.subr.bf16.mxu0 %v345_v27  ;;  %998 = vmatprep.subr.bf16.mxu1 %v345_v27  ;;  %v479_v27 = vld [vmem:[#allocation8 + $0x100] sm:$0xff] }
 0x153   :  { %839 = vmatpush3.bf16.msra.mxu0 %v337_v3  ;;  %1006 = vmatpush3.bf16.msra.mxu1 %v337_v3  ;;  %v513_v3 = vpack.c.bf16 %v453_v62, %v451_v61  ;;  %v540_v62 = vpack.c.bf16 %v506_v60, %v504_v59 }
 0x154   :  { %v988_v28 = vpop.f32.mrb[20].mxu0  ;;  %840 = vmatprep.subr.bf16.mxu0 %v346_v25  ;;  %999 = vmatprep.subr.bf16.mxu1 %v346_v25 }
 0x155   :  { %v290_v29 = vpop.f32.mrb[21].mxu0 }
 0x156   :  { %v989_v30 = vpop.f32.mrb[22].mxu0 }
 0x157   :  { %v348_v31 = vpack.c.bf16 %v989_v30, %v988_v28  ;;  %v293_v32 = vpop.f32.mrb[23].mxu0  ;;  %841 = vmatpush3.bf16.msra.mxu0 %v338_v1  ;;  %1007 = vmatpush3.bf16.msra.mxu1 %v338_v1  ;;  %v458_v1 = vld [vmem:[#allocation8 + $0x58] sm:$0xff]  ;;  %v481_v28 = vld [vmem:[#allocation8 + $0x110] sm:$0xff] }
 0x158   :  { %v347_v33 = vpack.c.bf16 %v293_v32, %v290_v29  ;;  %v516_v5 = vpack.c.bf16 %v458_v1, %v456_v0  ;;  %v484_v29 = vld [vmem:[#allocation8 + $0x128] sm:$0xff]  ;;  %v486_v30 = vld [vmem:[#allocation8 + $0x138] sm:$0xff]  ;;  %v505_v0 = vld [vmem:[#allocation8 + $0x1d0] sm:$0xff] }
 0x159   :  { %v530_v32 = vpack.c.bf16 %v486_v30, %v484_v29  ;;  %v508_v1 = vld [vmem:[#allocation8 + $0x1e8] sm:$0xff] }
 0x15a   :  { %842 = vmatprep.subr.bf16.mxu0 %v347_v33  ;;  %1000 = vmatprep.subr.bf16.mxu1 %v347_v33  ;;  %v483_v33 = vld [vmem:[#allocation8 + $0x120] sm:$0xff] }
 0x15b   :  { %843 = vmatpush3.bf16.msra.mxu0 %v339_v9  ;;  %1008 = vmatpush3.bf16.msra.mxu1 %v339_v9  ;;  %v455_v9 = vld [vmem:[#allocation8 + $0x40] sm:$0xff] }
 0x15c   :  { %v992_v34 = vpop.f32.mrb[24].mxu0  ;;  %844 = vmatprep.subr.bf16.mxu0 %v348_v31  ;;  %1001 = vmatprep.subr.bf16.mxu1 %v348_v31  ;;  %v527_v31 = vpack.c.bf16 %v481_v28, %v479_v27 }
 0x15d   :  { %v306_v35 = vpop.f32.mrb[25].mxu0 }
 0x15e   :  { %v993_v36 = vpop.f32.mrb[26].mxu0 }
 0x15f   :  { %v350_v37 = vpack.c.bf16 %v993_v36, %v992_v34  ;;  %v309_v38 = vpop.f32.mrb[27].mxu0  ;;  %845 = vmatpush3.bf16.msra.mxu0 %v340_v7  ;;  %1009 = vmatpush3.bf16.msra.mxu1 %v340_v7  ;;  %v473_v7 = vld [vmem:[#allocation8 + $0xd0] sm:$0xff]  ;;  %v490_v36 = vld [vmem:[#allocation8 + $0x158] sm:$0xff] }
 0x160   :  { %v349_v39 = vpack.c.bf16 %v309_v38, %v306_v35  ;;  %v523_v14 = vpack.c.bf16 %v473_v7, %v471_v6  ;;  %v485_v34 = vld [vmem:[#allocation8 + $0x130] sm:$0xff]  ;;  %v488_v35 = vld [vmem:[#allocation8 + $0x148] sm:$0xff] }
 0x161   :  { %v532_v38 = vpack.c.bf16 %v490_v36, %v488_v35  ;;  %v509_v6 = vld [vmem:[#allocation8 + $0x1f0] sm:$0xff] }
 0x162   :  { %846 = vmatprep.subr.bf16.mxu0 %v349_v39  ;;  %1002 = vmatprep.subr.bf16.mxu1 %v349_v39  ;;  %v487_v39 = vld [vmem:[#allocation8 + $0x140] sm:$0xff] }
 0x163   :  { %847 = vmatpush3.bf16.msra.mxu0 %v341_v15  ;;  %1010 = vmatpush3.bf16.msra.mxu1 %v341_v15  ;;  %v515_v15 = vpack.c.bf16 %v457_v10, %v455_v9  ;;  %v1207_v10 = vld [vmem:[%s1259_s3] ss:$0 sm:$0xff]  ;;  %s1135_s3 = smov [#allocation9]  }
 0x164   :  { %v996_v40 = vpop.f32.mrb[28].mxu0  ;;  %848 = vmatprep.subr.bf16.mxu0 %v350_v37  ;;  %1003 = vmatprep.subr.bf16.mxu1 %v350_v37  ;;  %v529_v37 = vpack.c.bf16 %v485_v34, %v483_v33  ;;  %s792_s30 = sshll.u32 %s1135_s3, 4  ;;  %s793_s30 = int_to_ptr.vmem [resolvable:$true] %s792_s30 }
 0x165   :  { %v322_v41 = vpop.f32.mrb[29].mxu0  ;;  %s1098_s5 = scalar_lea.vmem %s793_s30, 4096  ;;  %p1103_p11 = scmp.lt.s32.totalorder %s793_s30, %s793_s30 }
 0x166   :  { %v997_v42 = vpop.f32.mrb[30].mxu0  ;;  %p1099_p10 = scmp.ne.s32.totalorder %s793_s30, %s1098_s5  ;;  %p1104_p12 = scmp.lt.s32.totalorder %s1098_s5, %s1098_s5 }
 0x167   :  { %v352_v43 = vpack.c.bf16 %v997_v42, %v996_v40  ;;  %v325_v44 = vpop.f32.mrb[31].mxu0  ;;  %849 = vmatpush3.bf16.msra.mxu0 %v342_v13  ;;  %1011 = vmatpush3.bf16.msra.mxu1 %v342_v13  ;;  %v462_v13 = vld [vmem:[#allocation8 + $0x78] sm:$0xff]  ;;  %v489_v40 = vld [vmem:[#allocation8 + $0x150] sm:$0xff] }
 0x168   :  { %v351_v45 = vpack.c.bf16 %v325_v44, %v322_v41  ;;  %v518_v17 = vpack.c.bf16 %v462_v13, %v460_v12  ;;  %v492_v41 = vld [vmem:[#allocation8 + $0x168] sm:$0xff]  ;;  %v494_v42 = vld [vmem:[#allocation8 + $0x178] sm:$0xff]  ;;  %p1105_p13 = por %p1104_p12, %p1103_p11 }
 0x169   :  { %v534_v44 = vpack.c.bf16 %v494_v42, %v492_v41 }
 0x16a   :  { %850 = vmatprep.subr.bf16.mxu0 %v351_v45  ;;  %1004 = vmatprep.subr.bf16.mxu1 %v351_v45  ;;  %v491_v45 = vld [vmem:[#allocation8 + $0x160] sm:$0xff]  ;;  %p1106_p0 = pnand %p1105_p13, %p1099_p10 }
 0x16b   :  { %851 = vmatpush3.bf16.msra.mxu0 %v343_v21  ;;  %1012 = vmatpush3.bf16.msra.mxu1 %v343_v21  ;;  %v461_v21 = vld [vmem:[#allocation8 + $0x70] sm:$0xff]  ;;  %v533_v49 = vpack.c.bf16 %v493_v46, %v491_v45 }
 0x16c   :  { %852 = vmatprep.subr.bf16.mxu0 %v352_v43  ;;  %1005 = vmatprep.subr.bf16.mxu1 %v352_v43  ;;  %v517_v25 = vpack.c.bf16 %v461_v21, %v459_v20  ;;  %v531_v43 = vpack.c.bf16 %v489_v40, %v487_v39 }
 0x16f   :  { %853 = vmatpush3.bf16.msra.mxu0 %v1200_v19  ;;  %1013 = vmatpush3.bf16.msra.mxu1 %v1200_v19  ;;  %v477_v19 = vld [vmem:[#allocation8 + $0xf0] sm:$0xff] }
 0x170   :  { %v525_v24 = vpack.c.bf16 %v477_v19, %v475_v18 }
 0x172   :  { %627 = vmatmul.mubr.bf16.vlgmr.msra.gmra.mrb[0].mxu1 %v519_v54  ;;  %595 = vmatmul.mubr.bf16.vlgmr.msra.gmra.mrb[32].mxu0 %v511_v55  ;;  %v502_v54 = vld [vmem:[#allocation8 + $0x1b8] sm:$0xff]  ;;  %v535_v55 = vpack.c.bf16 %v497_v52, %v495_v51 }
 0x173   :  { %634 = vmatprep.mubr.bf16.mxu1 %v522_v56  ;;  %602 = vmatprep.mubr.bf16.mxu0 %v514_v57  ;;  %v538_v56 = vpack.c.bf16 %v502_v54, %v500_v53  ;;  %v499_v57 = vld [vmem:[#allocation8 + $0x1a0] sm:$0xff] }
 0x174   :  { %v537_v61 = vpack.c.bf16 %v501_v58, %v499_v57 }
 0x17a   :  { %635 = vmatmul.mubr.bf16.gmra.mrb[4].mxu1 %v521_v2  ;;  %603 = vmatmul.mubr.bf16.gmra.mrb[36].mxu0 %v513_v3  ;;  %v510_v2 = vld [vmem:[#allocation8 + $0x1f8] sm:$0xff]  ;;  %v539_v3 = vpack.c.bf16 %v505_v0, %v503_v63 }
 0x17b   :  { %642 = vmatprep.mubr.bf16.mxu1 %v524_v4  ;;  %610 = vmatprep.mubr.bf16.mxu0 %v516_v5  ;;  %v542_v4 = vpack.c.bf16 %v510_v2, %v508_v1  ;;  %v507_v5 = vld [vmem:[#allocation8 + $0x1e0] sm:$0xff] }
 0x17c   :  { %v541_v7 = vpack.c.bf16 %v509_v6, %v507_v5 }
 0x182   :  { %643 = vmatmul.mubr.bf16.gmra.mrb[8].mxu1 %v523_v14  ;;  %611 = vmatmul.mubr.bf16.gmra.mrb[40].mxu0 %v515_v15 }
 0x183   :  { %650 = vmatprep.mubr.bf16.mxu1 %v526_v16  ;;  %618 = vmatprep.mubr.bf16.mxu0 %v518_v17 }
 0x18a   :  { %651 = vmatmul.mubr.bf16.gmra.mrb[12].mxu1 %v525_v24  ;;  %619 = vmatmul.mubr.bf16.gmra.mrb[44].mxu0 %v517_v25 }
 0x18b   :  { %658 = vmatprep.mubr.bf16.mxu1 %v528_v26 }
 0x192   :  { %659 = vmatmul.mubr.bf16.gmra.mrb[16].mxu1 %v527_v31 }
 0x193   :  { %666 = vmatprep.mubr.bf16.mxu1 %v530_v32 }
 0x19a   :  { %667 = vmatmul.mubr.bf16.gmra.mrb[20].mxu1 %v529_v37 }
 0x19b   :  { %674 = vmatprep.mubr.bf16.mxu1 %v532_v38 }
 0x1a2   :  { %675 = vmatmul.mubr.bf16.gmra.mrb[24].mxu1 %v531_v43 }
 0x1a3   :  { %682 = vmatprep.mubr.bf16.mxu1 %v534_v44 }
 0x1aa   :  { %683 = vmatmul.mubr.bf16.gmra.mrb[28].mxu1 %v533_v49 }
 0x1ab   :  { %690 = vmatprep.mubr.bf16.mxu1 %v536_v50 }
 0x1b2   :  { %691 = vmatmul.mubr.bf16.gmra.mrb[32].mxu1 %v535_v55 }
 0x1b3   :  { %698 = vmatprep.mubr.bf16.mxu1 %v538_v56 }
 0x1ba   :  { %699 = vmatmul.mubr.bf16.gmra.mrb[36].mxu1 %v537_v61 }
 0x1bb   :  { %706 = vmatprep.mubr.bf16.mxu1 %v540_v62 }
 0x1c2   :  { %707 = vmatmul.mubr.bf16.gmra.mrb[40].mxu1 %v539_v3 }
 0x1c3   :  { %714 = vmatprep.mubr.bf16.mxu1 %v542_v4 }
 0x1ca   :  { %715 = vmatmul.mubr.bf16.gmra.mrb[44].mxu1 %v541_v7 }
 0x245   :  { %v878_v8 = vpop.f32.mrb[0].mxu1  ;;  %v854_v9 = vpop.f32.mrb[32].mxu0 }
 0x246   :  { %v879_v11 = vpop.f32.mrb[1].mxu1  ;;  %v855_v12 = vpop.f32.mrb[33].mxu0 }
 0x247   :  { %v880_v13 = vadd.f32 %v879_v11, %v878_v8  ;;  %v881_v14 = vpop.f32.mrb[2].mxu1  ;;  %v856_v15 = vadd.f32 %v855_v12, %v854_v9  ;;  %v857_v16 = vpop.f32.mrb[34].mxu0 }
 0x248   :  { %v882_v17 = vpop.f32.mrb[3].mxu1  ;;  %v858_v18 = vpop.f32.mrb[35].mxu0 }
 0x249   :  { %v731_v19 = vadd.f32 %v880_v13, %v1207_v10  ;;  %v883_v20 = vadd.f32 %v882_v17, %v881_v14  ;;  %v723_v21 = vadd.f32 %v856_v15, %v1207_v10  ;;  %v859_v22 = vadd.f32 %v858_v18, %v857_v16 }
 0x24b   :  { %763 = vst [vmem:[#allocation9 + $0x40] sm:$0xff] %v731_v19  ;;  %v732_v23 = vadd.f32 %v883_v20, %v1207_v10  ;;  %755 = vst [vmem:[#allocation9] sm:$0xff] %v723_v21  ;;  %v724_v24 = vadd.f32 %v859_v22, %v1207_v10 }
 0x24d   :  { %764 = vst [vmem:[#allocation9 + $0x48] sm:$0xff] %v732_v23  ;;  %v884_v25 = vpop.f32.mrb[4].mxu1  ;;  %756 = vst [vmem:[#allocation9 + $0x8] sm:$0xff] %v724_v24  ;;  %v860_v26 = vpop.f32.mrb[36].mxu0 }
 0x24e   :  { %v885_v27 = vpop.f32.mrb[5].mxu1  ;;  %v861_v28 = vpop.f32.mrb[37].mxu0 }
 0x24f   :  { %v886_v29 = vadd.f32 %v885_v27, %v884_v25  ;;  %v887_v30 = vpop.f32.mrb[6].mxu1  ;;  %v862_v31 = vadd.f32 %v861_v28, %v860_v26  ;;  %v863_v32 = vpop.f32.mrb[38].mxu0 }
 0x250   :  { %v888_v33 = vpop.f32.mrb[7].mxu1  ;;  %v864_v34 = vpop.f32.mrb[39].mxu0 }
 0x251   :  { %v733_v35 = vadd.f32 %v886_v29, %v1207_v10  ;;  %v889_v36 = vadd.f32 %v888_v33, %v887_v30  ;;  %v725_v37 = vadd.f32 %v862_v31, %v1207_v10  ;;  %v865_v38 = vadd.f32 %v864_v34, %v863_v32 }
 0x253   :  { %765 = vst [vmem:[#allocation9 + $0x50] sm:$0xff] %v733_v35  ;;  %v734_v39 = vadd.f32 %v889_v36, %v1207_v10  ;;  %757 = vst [vmem:[#allocation9 + $0x10] sm:$0xff] %v725_v37  ;;  %v726_v40 = vadd.f32 %v865_v38, %v1207_v10 }
 0x255   :  { %766 = vst [vmem:[#allocation9 + $0x58] sm:$0xff] %v734_v39  ;;  %v890_v41 = vpop.f32.mrb[8].mxu1  ;;  %758 = vst [vmem:[#allocation9 + $0x18] sm:$0xff] %v726_v40  ;;  %v866_v42 = vpop.f32.mrb[40].mxu0 }
 0x256   :  { %v891_v43 = vpop.f32.mrb[9].mxu1  ;;  %v867_v44 = vpop.f32.mrb[41].mxu0 }
 0x257   :  { %v892_v45 = vadd.f32 %v891_v43, %v890_v41  ;;  %v893_v46 = vpop.f32.mrb[10].mxu1  ;;  %v868_v47 = vadd.f32 %v867_v44, %v866_v42  ;;  %v869_v48 = vpop.f32.mrb[42].mxu0 }
 0x258   :  { %v894_v49 = vpop.f32.mrb[11].mxu1  ;;  %v870_v50 = vpop.f32.mrb[43].mxu0 }
 0x259   :  { %v735_v51 = vadd.f32 %v892_v45, %v1207_v10  ;;  %v895_v52 = vadd.f32 %v894_v49, %v893_v46  ;;  %v727_v53 = vadd.f32 %v868_v47, %v1207_v10  ;;  %v871_v54 = vadd.f32 %v870_v50, %v869_v48 }
 0x25b   :  { %767 = vst [vmem:[#allocation9 + $0x60] sm:$0xff] %v735_v51  ;;  %v736_v55 = vadd.f32 %v895_v52, %v1207_v10  ;;  %759 = vst [vmem:[#allocation9 + $0x20] sm:$0xff] %v727_v53  ;;  %v728_v56 = vadd.f32 %v871_v54, %v1207_v10 }
 0x25d   :  { %768 = vst [vmem:[#allocation9 + $0x68] sm:$0xff] %v736_v55  ;;  %v896_v57 = vpop.f32.mrb[12].mxu1  ;;  %760 = vst [vmem:[#allocation9 + $0x28] sm:$0xff] %v728_v56  ;;  %v872_v58 = vpop.f32.mrb[44].mxu0 }
 0x25e   :  { %v897_v59 = vpop.f32.mrb[13].mxu1  ;;  %v873_v60 = vpop.f32.mrb[45].mxu0 }
 0x25f   :  { %v898_v61 = vadd.f32 %v897_v59, %v896_v57  ;;  %v899_v62 = vpop.f32.mrb[14].mxu1  ;;  %v874_v63 = vadd.f32 %v873_v60, %v872_v58  ;;  %v875_v0 = vpop.f32.mrb[46].mxu0 }
 0x260   :  { %v900_v1 = vpop.f32.mrb[15].mxu1  ;;  %v876_v2 = vpop.f32.mrb[47].mxu0 }
 0x261   :  { %v737_v3 = vadd.f32 %v898_v61, %v1207_v10  ;;  %v901_v4 = vadd.f32 %v900_v1, %v899_v62  ;;  %v729_v5 = vadd.f32 %v874_v63, %v1207_v10  ;;  %v877_v6 = vadd.f32 %v876_v2, %v875_v0 }
 0x263   :  { %769 = vst [vmem:[#allocation9 + $0x70] sm:$0xff] %v737_v3  ;;  %v738_v7 = vadd.f32 %v901_v4, %v1207_v10  ;;  %761 = vst [vmem:[#allocation9 + $0x30] sm:$0xff] %v729_v5  ;;  %v730_v8 = vadd.f32 %v877_v6, %v1207_v10 }
 0x265   :  { %770 = vst [vmem:[#allocation9 + $0x78] sm:$0xff] %v738_v7  ;;  %v902_v9 = vpop.f32.mrb[16].mxu1  ;;  %762 = vst [vmem:[#allocation9 + $0x38] sm:$0xff] %v730_v8 }
 0x266   :  { %v903_v11 = vpop.f32.mrb[17].mxu1 }
 0x267   :  { %v904_v12 = vadd.f32 %v903_v11, %v902_v9  ;;  %v905_v13 = vpop.f32.mrb[18].mxu1 }
 0x268   :  { %v906_v14 = vpop.f32.mrb[19].mxu1 }
 0x269   :  { %v739_v15 = vadd.f32 %v904_v12, %v1207_v10  ;;  %v907_v16 = vadd.f32 %v906_v14, %v905_v13 }
 0x26b   :  { %771 = vst [vmem:[#allocation9 + $0x80] sm:$0xff] %v739_v15  ;;  %v740_v17 = vadd.f32 %v907_v16, %v1207_v10 }
 0x26d   :  { %772 = vst [vmem:[#allocation9 + $0x88] sm:$0xff] %v740_v17  ;;  %v908_v18 = vpop.f32.mrb[20].mxu1 }
 0x26e   :  { %v909_v19 = vpop.f32.mrb[21].mxu1 }
 0x26f   :  { %v910_v20 = vadd.f32 %v909_v19, %v908_v18  ;;  %v911_v21 = vpop.f32.mrb[22].mxu1 }
 0x270   :  { %v912_v22 = vpop.f32.mrb[23].mxu1 }
 0x271   :  { %v741_v23 = vadd.f32 %v910_v20, %v1207_v10  ;;  %v913_v24 = vadd.f32 %v912_v22, %v911_v21 }
 0x273   :  { %773 = vst [vmem:[#allocation9 + $0x90] sm:$0xff] %v741_v23  ;;  %v742_v25 = vadd.f32 %v913_v24, %v1207_v10 }
 0x275   :  { %774 = vst [vmem:[#allocation9 + $0x98] sm:$0xff] %v742_v25  ;;  %v914_v26 = vpop.f32.mrb[24].mxu1 }
 0x276   :  { %v915_v27 = vpop.f32.mrb[25].mxu1 }
 0x277   :  { %v916_v28 = vadd.f32 %v915_v27, %v914_v26  ;;  %v917_v29 = vpop.f32.mrb[26].mxu1 }
 0x278   :  { %v918_v30 = vpop.f32.mrb[27].mxu1 }
 0x279   :  { %v743_v31 = vadd.f32 %v916_v28, %v1207_v10  ;;  %v919_v32 = vadd.f32 %v918_v30, %v917_v29 }
 0x27b   :  { %775 = vst [vmem:[#allocation9 + $0xa0] sm:$0xff] %v743_v31  ;;  %v744_v33 = vadd.f32 %v919_v32, %v1207_v10 }
 0x27d   :  { %776 = vst [vmem:[#allocation9 + $0xa8] sm:$0xff] %v744_v33  ;;  %v920_v34 = vpop.f32.mrb[28].mxu1 }
 0x27e   :  { %v921_v35 = vpop.f32.mrb[29].mxu1 }
 0x27f   :  { %v922_v36 = vadd.f32 %v921_v35, %v920_v34  ;;  %v923_v37 = vpop.f32.mrb[30].mxu1 }
 0x280   :  { %v924_v38 = vpop.f32.mrb[31].mxu1 }
 0x281   :  { %v745_v39 = vadd.f32 %v922_v36, %v1207_v10  ;;  %v925_v40 = vadd.f32 %v924_v38, %v923_v37 }
 0x283   :  { %777 = vst [vmem:[#allocation9 + $0xb0] sm:$0xff] %v745_v39  ;;  %v746_v41 = vadd.f32 %v925_v40, %v1207_v10 }
 0x285   :  { %778 = vst [vmem:[#allocation9 + $0xb8] sm:$0xff] %v746_v41  ;;  %v926_v42 = vpop.f32.mrb[32].mxu1 }
 0x286   :  { %v927_v43 = vpop.f32.mrb[33].mxu1 }
 0x287   :  { %v928_v44 = vadd.f32 %v927_v43, %v926_v42  ;;  %v929_v45 = vpop.f32.mrb[34].mxu1 }
 0x288   :  { %v930_v46 = vpop.f32.mrb[35].mxu1 }
 0x289   :  { %v747_v47 = vadd.f32 %v928_v44, %v1207_v10  ;;  %v931_v48 = vadd.f32 %v930_v46, %v929_v45 }
 0x28b   :  { %779 = vst [vmem:[#allocation9 + $0xc0] sm:$0xff] %v747_v47  ;;  %v748_v49 = vadd.f32 %v931_v48, %v1207_v10 }
 0x28d   :  { %780 = vst [vmem:[#allocation9 + $0xc8] sm:$0xff] %v748_v49  ;;  %v932_v50 = vpop.f32.mrb[36].mxu1 }
 0x28e   :  { %v933_v51 = vpop.f32.mrb[37].mxu1 }
 0x28f   :  { %v934_v52 = vadd.f32 %v933_v51, %v932_v50  ;;  %v935_v53 = vpop.f32.mrb[38].mxu1 }
 0x290   :  { %v936_v54 = vpop.f32.mrb[39].mxu1 }
 0x291   :  { %v749_v55 = vadd.f32 %v934_v52, %v1207_v10  ;;  %v937_v56 = vadd.f32 %v936_v54, %v935_v53 }
 0x293   :  { %781 = vst [vmem:[#allocation9 + $0xd0] sm:$0xff] %v749_v55  ;;  %v750_v57 = vadd.f32 %v937_v56, %v1207_v10 }
 0x295   :  { %782 = vst [vmem:[#allocation9 + $0xd8] sm:$0xff] %v750_v57  ;;  %v938_v58 = vpop.f32.mrb[40].mxu1 }
 0x296   :  { %v939_v59 = vpop.f32.mrb[41].mxu1 }
 0x297   :  { %v940_v60 = vadd.f32 %v939_v59, %v938_v58  ;;  %v941_v61 = vpop.f32.mrb[42].mxu1 }
 0x298   :  { %v942_v62 = vpop.f32.mrb[43].mxu1 }
 0x299   :  { %v751_v63 = vadd.f32 %v940_v60, %v1207_v10  ;;  %v943_v0 = vadd.f32 %v942_v62, %v941_v61 }
 0x29b   :  { %783 = vst [vmem:[#allocation9 + $0xe0] sm:$0xff] %v751_v63  ;;  %v752_v1 = vadd.f32 %v943_v0, %v1207_v10 }
 0x29d   :  { %784 = vst [vmem:[#allocation9 + $0xe8] sm:$0xff] %v752_v1  ;;  %v944_v2 = vpop.f32.mrb[44].mxu1 }
 0x29e   :  { %v945_v3 = vpop.f32.mrb[45].mxu1 }
 0x29f   :  { %v946_v4 = vadd.f32 %v945_v3, %v944_v2  ;;  %v947_v5 = vpop.f32.mrb[46].mxu1 }
 0x2a0   :  { %v948_v6 = vpop.f32.mrb[47].mxu1 }
 0x2a1   :  { %v753_v7 = vadd.f32 %v946_v4, %v1207_v10  ;;  %v949_v8 = vadd.f32 %v948_v6, %v947_v5 }
 0x2a3   :  { %785 = vst [vmem:[#allocation9 + $0xf0] sm:$0xff] %v753_v7  ;;  %v754_v9 = vadd.f32 %v949_v8, %v1207_v10 }
 0x2a5   :  { %786 = vst [vmem:[#allocation9 + $0xf8] sm:$0xff] %v754_v9 }
 0x2a6   :  { %1109 = shalt.err (!%p1106_p0)
}
 0x2a7   :  { %s1110_s8 = scalar_lea.hbm %s1260_s4, 4096 }
 0x2a8   :  { %p1111_p1 = scmp.ne.s32.totalorder %s1260_s4, %s1110_s8  ;;  %p1114_p2 = scmp.lt.u32.totalorder %s1110_s8, %s1260_s4 }
 0x2aa   :  { %p1116_p3 = pnand %p1114_p2, %p1111_p1 }
 0x2ac   :  { %1119 = shalt.err (!%p1116_p3)
}
 0x2ad   :  { %798 = dma.vmem_to_hbm [thread:$0]  %s793_s30, 4096, %s1260_s4, [#allocation5], %s1130_s1, %s1130_s1, %s1131_s13  }
 0x2ae   :  { %1124 = dma.done.wait [#allocation5], 4096  }
 0x2af   :  { %1125 = vsyncadd [#allocation5], 4294963200 }
 0x2b0   :  { %802 = vsyncpa [#allocation4], 1 }
 0x2b1   :  { %803 = vsyncpa [#allocation7], 1 }
 0x2b2   :  { %804 = vsyncpa [#allocation5], 1 }

</bundles_post_ra>
